<compile_context>
chip_gen: v7x
topology: tpu7x:2x2x1
jax: 0.10.0
libtpu: 0.0.40
codegen_flags: <defaults>
</compile_context>

<pallas_src>
import jax
import jax.numpy as jnp
from jax.experimental import pallas as pl
from jax.experimental.pallas import tpu as pltpu


def item_embed_kernel(ids_ref, tab_ref, out_ref):
    # ids_ref : [bm, C]     int32  item feature ids for this batch tile
    # tab_ref : [C, V, D]   f32    stacked per-column embedding tables
    # out_ref : [bm, C*D]   f32    concatenated embeddings (lane-dense)
    ids = ids_ref[...]                                            # [bm, C]
    bm, C = ids.shape
    _, V, D = tab_ref.shape

    iota_v = jax.lax.broadcasted_iota(jnp.int32, (bm, V), 1)      # [bm, V]
    cols = []
    for c in range(C):                                            # C is tiny; unrolled
        onehot_c = (iota_v == ids[:, c:c + 1]).astype(jnp.float32)   # [bm, V]
        cols.append(jnp.dot(onehot_c, tab_ref[c],
                            preferred_element_type=jnp.float32))     # [bm, D]

    # Single unmasked store of the full lane-dense tile.
    out_ref[...] = jnp.concatenate(cols, axis=1)                  # [bm, C*D]


def item_embeddings(items, tables, *, block_b=256):
    """items: [B, C] integer ids; tables: [C, V, D] f32 (rows >= vocab_i unused).

    Returns [B, C*D] f32, equal to concatenating per-column embedding lookups
    along dim 1 (PyTorch `item.forward` semantics).
    """
    B, C = items.shape
    Ct, V, D = tables.shape
    assert Ct == C
    # NOTE: keep C*D a multiple of 128 (pad D at init) for unmasked stores.

    # Batch tiling: one grid step for small B; tile + megacore-parallel axis
    # for large B (amortizes per-step overhead, splits across v7x's 2 TCs).
    bm = B if (B <= block_b or B % block_b != 0) else block_b
    grid = (B // bm,)

    return pl.pallas_call(
        item_embed_kernel,
        out_shape=jax.ShapeDtypeStruct((B, C * D), jnp.float32),
        grid=grid,
        in_specs=[
            pl.BlockSpec((bm, C), lambda i: (i, 0)),
            pl.BlockSpec((C, V, D), lambda i: (0, 0, 0)),
        ],
        out_specs=pl.BlockSpec((bm, C * D), lambda i: (i, 0)),
        compiler_params=pltpu.CompilerParams(
            dimension_semantics=("parallel",)),
    )(items.astype(jnp.int32), tables)


if __name__ == "__main__":
    # Synthetic config consistent with the module's __init__:
    #   item_num_cols = C, per-column vocab sizes, embedding_dim = D.
    B = 8                         # batch of items
    C = 4                         # item_num_cols
    vocab_sizes = [7, 5, 11, 3]   # features_max_value per column
    D = 32                        # embedding_dim (C*D = 128 -> lane-dense output)
    V = 16                        # tables padded once at init to a common,
                                  # 8-aligned vocab size (rows >= vocab_i unused)

    key = jax.random.PRNGKey(0)
    k_tab, k_ids = jax.random.split(key)

    # Deterministic per-column embedding tables, stacked & zero-padded to V
    # (init-time parameter construction, not part of the forward hot path).
    tables = jax.random.normal(k_tab, (C, V, D), dtype=jnp.float32) * 0.02
    row_ids = jnp.arange(V)[None, :, None]                         # [1, V, 1]
    valid = row_ids < jnp.asarray(vocab_sizes)[:, None, None]       # [C, V, 1]
    tables = jnp.where(valid, tables, 0.0)

    # Deterministic item ids, each column bounded by its vocab size.
    raw = jax.random.randint(k_ids, (B, C), 0, 10_000)
    items = (raw % jnp.asarray(vocab_sizes)[None, :]).astype(jnp.int32)

    out = item_embeddings(items, tables)
    out = jax.block_until_ready(out)

    # Pure-JAX reference (per-column gather + concat along dim 1).
    ref = jnp.concatenate([tables[c][items[:, c]] for c in range(C)], axis=1)
    assert out.shape == (B, C * D)
    assert jnp.allclose(out, ref, atol=1e-5, rtol=1e-5)

    print("KERNEL_OK")
</pallas_src>

<mosaic_0001>
module attributes {stable_mosaic.version = 11 : i64} {
  func.func @item_embed_kernel(%arg0: i32, %arg1: memref<8x4xi32, #tpu.memory_space<vmem>>, %arg2: memref<4x16x32xf32, #tpu.memory_space<vmem>>, %arg3: memref<8x128xf32, #tpu.memory_space<vmem>>) attributes {dimension_semantics = [#tpu.dimension_semantics<parallel>], iteration_bounds = array<i64: 1>, scalar_prefetch = 0 : i64, scratch_operands = 0 : i64, tpu.core_type = #tpu.core_type<tc>, window_params = [{transform_indices = @transform_0, window_bounds = array<i64: 8, 4>}, {pipeline_mode = #tpu.pipeline_mode<synchronous>, transform_indices = @transform_1, window_bounds = array<i64: 4, 16, 32>}, {transform_indices = @transform_2, window_bounds = array<i64: 8, 128>}]} {
    %c0 = arith.constant 0 : index
    %c0_0 = arith.constant 0 : index
    %0 = vector.load %arg1[%c0, %c0_0] : memref<8x4xi32, #tpu.memory_space<vmem>>, vector<8x4xi32>
    %1 = tpu.iota {dimensions = array<i32: 1>} : vector<8x16xi32>
    %2 = vector.extract_strided_slice %0 {offsets = [0, 0], sizes = [8, 1], strides = [1, 1]} : vector<8x4xi32> to vector<8x1xi32>
    %3 = vector.broadcast %2 : vector<8x1xi32> to vector<8x16xi32>
    %4 = arith.cmpi eq, %1, %3 : vector<8x16xi32>
    %5 = arith.extui %4 : vector<8x16xi1> to vector<8x16xi32>
    %6 = arith.sitofp %5 : vector<8x16xi32> to vector<8x16xf32>
    %c0_1 = arith.constant 0 : index
    %c0_2 = arith.constant 0 : index
    %c0_3 = arith.constant 0 : index
    %7 = vector.load %arg2[%c0_1, %c0_2, %c0_3] : memref<4x16x32xf32, #tpu.memory_space<vmem>>, vector<1x16x32xf32>
    %8 = vector.shape_cast %7 : vector<1x16x32xf32> to vector<16x32xf32>
    %cst = arith.constant dense<0.000000e+00> : vector<8x32xf32>
    %9 = tpu.matmul %6, %8, %cst {dimension_numbers = #tpu.dot_dimension_numbers<[1], [0], [0], [1], [0, 0, 1, 1], [], []>} : vector<8x16xf32>, vector<16x32xf32>, vector<8x32xf32> -> vector<8x32xf32>
    %10 = vector.extract_strided_slice %0 {offsets = [0, 1], sizes = [8, 1], strides = [1, 1]} : vector<8x4xi32> to vector<8x1xi32>
    %11 = vector.broadcast %10 : vector<8x1xi32> to vector<8x16xi32>
    %12 = arith.cmpi eq, %1, %11 : vector<8x16xi32>
    %13 = arith.extui %12 : vector<8x16xi1> to vector<8x16xi32>
    %14 = arith.sitofp %13 : vector<8x16xi32> to vector<8x16xf32>
    %c1 = arith.constant 1 : index
    %c0_4 = arith.constant 0 : index
    %c0_5 = arith.constant 0 : index
    %15 = vector.load %arg2[%c1, %c0_4, %c0_5] : memref<4x16x32xf32, #tpu.memory_space<vmem>>, vector<1x16x32xf32>
    %16 = vector.shape_cast %15 : vector<1x16x32xf32> to vector<16x32xf32>
    %cst_6 = arith.constant dense<0.000000e+00> : vector<8x32xf32>
    %17 = tpu.matmul %14, %16, %cst_6 {dimension_numbers = #tpu.dot_dimension_numbers<[1], [0], [0], [1], [0, 0, 1, 1], [], []>} : vector<8x16xf32>, vector<16x32xf32>, vector<8x32xf32> -> vector<8x32xf32>
    %18 = vector.extract_strided_slice %0 {offsets = [0, 2], sizes = [8, 1], strides = [1, 1]} : vector<8x4xi32> to vector<8x1xi32>
    %19 = vector.broadcast %18 : vector<8x1xi32> to vector<8x16xi32>
    %20 = arith.cmpi eq, %1, %19 : vector<8x16xi32>
    %21 = arith.extui %20 : vector<8x16xi1> to vector<8x16xi32>
    %22 = arith.sitofp %21 : vector<8x16xi32> to vector<8x16xf32>
    %c2 = arith.constant 2 : index
    %c0_7 = arith.constant 0 : index
    %c0_8 = arith.constant 0 : index
    %23 = vector.load %arg2[%c2, %c0_7, %c0_8] : memref<4x16x32xf32, #tpu.memory_space<vmem>>, vector<1x16x32xf32>
    %24 = vector.shape_cast %23 : vector<1x16x32xf32> to vector<16x32xf32>
    %cst_9 = arith.constant dense<0.000000e+00> : vector<8x32xf32>
    %25 = tpu.matmul %22, %24, %cst_9 {dimension_numbers = #tpu.dot_dimension_numbers<[1], [0], [0], [1], [0, 0, 1, 1], [], []>} : vector<8x16xf32>, vector<16x32xf32>, vector<8x32xf32> -> vector<8x32xf32>
    %26 = vector.extract_strided_slice %0 {offsets = [0, 3], sizes = [8, 1], strides = [1, 1]} : vector<8x4xi32> to vector<8x1xi32>
    %27 = vector.broadcast %26 : vector<8x1xi32> to vector<8x16xi32>
    %28 = arith.cmpi eq, %1, %27 : vector<8x16xi32>
    %29 = arith.extui %28 : vector<8x16xi1> to vector<8x16xi32>
    %30 = arith.sitofp %29 : vector<8x16xi32> to vector<8x16xf32>
    %c3 = arith.constant 3 : index
    %c0_10 = arith.constant 0 : index
    %c0_11 = arith.constant 0 : index
    %31 = vector.load %arg2[%c3, %c0_10, %c0_11] : memref<4x16x32xf32, #tpu.memory_space<vmem>>, vector<1x16x32xf32>
    %32 = vector.shape_cast %31 : vector<1x16x32xf32> to vector<16x32xf32>
    %cst_12 = arith.constant dense<0.000000e+00> : vector<8x32xf32>
    %33 = tpu.matmul %30, %32, %cst_12 {dimension_numbers = #tpu.dot_dimension_numbers<[1], [0], [0], [1], [0, 0, 1, 1], [], []>} : vector<8x16xf32>, vector<16x32xf32>, vector<8x32xf32> -> vector<8x32xf32>
    %34 = tpu.concatenate %9, %17, %25, %33 in 1 : vector<8x32xf32>, vector<8x32xf32>, vector<8x32xf32>, vector<8x32xf32> -> vector<8x128xf32>
    %c0_13 = arith.constant 0 : index
    %c0_14 = arith.constant 0 : index
    %35 = vector.load %arg3[%c0_13, %c0_14] : memref<8x128xf32, #tpu.memory_space<vmem>>, vector<8x128xf32>
    tpu.vector_store %arg3[%c0_13, %c0_14], %34 {strides = array<i32>} : memref<8x128xf32, #tpu.memory_space<vmem>>, vector<8x128xf32>,
    return
  }
  func.func @transform_0(%arg0: i32) -> (i32, i32) {
    %c0_i32 = arith.constant 0 : i32
    %c0_i32_0 = arith.constant 0 : i32
    return %arg0, %c0_i32 : i32, i32
  }
  func.func @transform_1(%arg0: i32) -> (i32, i32, i32) {
    %c0_i32 = arith.constant 0 : i32
    %c0_i32_0 = arith.constant 0 : i32
    %c0_i32_1 = arith.constant 0 : i32
    %c0_i32_2 = arith.constant 0 : i32
    return %c0_i32, %c0_i32_0, %c0_i32_1 : i32, i32, i32
  }
  func.func @transform_2(%arg0: i32) -> (i32, i32) {
    %c0_i32 = arith.constant 0 : i32
    %c0_i32_0 = arith.constant 0 : i32
    return %arg0, %c0_i32 : i32, i32
  }
}

</mosaic_0001>

<bundles_post_ra>
// kernel: tpu_custom_call.1
= control target key start
LH: loop header
LB: loop body
LE: loop exit
PB: predicated region body
PF: predicated region fallthrough
CT: control target
= control target key end

     0   :  { %7 = vsyncpa [#allocation3], 0  ;;  %s582_s0 = inlined_call_operand.vmem [shape: s32[8,4], index: 0, kind: input, shape index: {}]   ;;  %s583_s1 = inlined_call_operand.hbm [shape: f32[4,16,32], index: 1, kind: input, shape index: {}]   ;;  %s584_s2 = inlined_call_operand.hbm [shape: f32[8,128], index: 2, kind: output, shape index: {}]  }
   0x1   :  { %8 = vsyncpa [#allocation4], 0  ;;  %s518_s9 = smov [#allocation2]   ;;  %s470_s13 = scalar_lea.hbm %s583_s1, 1024 }
   0x2   :  { %s16_s10 = sshll.u32 %s518_s9, 4  ;;  %p471_p0 = scmp.ne.s32.totalorder %s583_s1, %s470_s13  ;;  %s17_s10 = int_to_ptr.vmem [resolvable:$true] %s16_s10 }
   0x3   :  { %p474_p1 = scmp.lt.u32.totalorder %s470_s13, %s583_s1 }
   0x5   :  { %p476_p2 = pnand %p474_p1, %p471_p0 }
   0x7   :  { %479 = shalt.err (!%p476_p2)
}
   0x8   :  { %s480_s18 = scalar_lea.vmem %s17_s10, 1024  ;;  %p485_p4 = scmp.lt.s32.totalorder %s17_s10, %s17_s10 }
   0x9   :  { %p481_p3 = scmp.ne.s32.totalorder %s17_s10, %s480_s18  ;;  %p486_p5 = scmp.lt.s32.totalorder %s480_s18, %s480_s18 }
   0xb   :  { %p487_p6 = por %p486_p5, %p485_p4 }
   0xd   :  { %p488_p7 = pnand %p487_p6, %p481_p3 }
   0xf   :  { %491 = shalt.err (!%p488_p7)
}
  0x10   :  { %s519_s19 = smov 128   ;;  %s520_s20 = smov 8  }
  0x11   :  { %22 = dma.hbm_to_vmem [thread:$0]  %s583_s1, 1024, %s17_s10, [#allocation3], %s519_s19, %s519_s19, %s520_s20  }
  0x12   :  { %514 = dma.done.wait [#allocation3], 1024  }
  0x13   :  { %515 = vsyncadd [#allocation3], 4294966272  ;;  %v521_v0 = vmov 0   ;;  %v522_v1 = vmov 2   ;;  %v523_v2 = vmov 0.0|0.0   ;;  %v26_v3 = vld [vmem:[%s582_s0] sm:$0xff]  ;;  %v27_v13 = vlaneseq }
  0x14   :  { %465 = vset.pattern.permute.xlu0 %v521_v0  ;;  %467 = vset.pattern.permute.xlu1 %v522_v1  ;;  %v35_v4 = vld [vmem:[#allocation2] sm:$0xff]  ;;  %v36_v5 = vld [vmem:[#allocation2 + $0x8] sm:$0xff]  ;;  %vm524_vm0 = vmmov 0   ;;  %v525_v7 = vmov 0.0   ;;  %v118_v8 = vld [vmem:[#allocation2 + $0x10] sm:$0xff]  ;;  %v526_v11 = vmov 1  }
  0x15   :  { %439 = vmatprep.subr.bf16.mxu0 %v523_v2  ;;  %442 = vmatprep.subr.bf16.mxu1 %v523_v2  ;;  %v440_v6 = vpack.c.bf16 %v36_v5, %v35_v4  ;;  %v119_v9 = vld [vmem:[#allocation2 + $0x18] sm:$0xff]  ;;  %v527_v12 = vmov 3   ;;  %v28_v14 = vand.u32 127, %v27_v13  ;;  %v200_v15 = vld [vmem:[#allocation2 + $0x20] sm:$0xff]  ;;  %v201_v16 = vld [vmem:[#allocation2 + $0x28] sm:$0xff]  ;;  %vm37_vm1 = vcmask 130048  }
  0x16   :  { %30 = vperm.xlu0 %465, %v26_v3   ;;  %194 = vperm.xlu1 %467, %v26_v3   ;;  %v443_v10 = vpack.c.bf16 %v119_v9, %v118_v8  ;;  %v446_v19 = vpack.c.bf16 %v201_v16, %v200_v15  ;;  %v282_v21 = vld [vmem:[#allocation2 + $0x30] sm:$0xff]  ;;  %v283_v22 = vld [vmem:[#allocation2 + $0x38] sm:$0xff]  ;;  %s528_s0 = smov 64   ;;  %s529_s1 = smov 32   ;;  %vm369_vm6 = vcmask 261120   ;;  %vm371_vm7 = vcmask 523264  }
  0x17   :  { %415 = vmatprep.mubr.msk.f32.mxu0 %vm524_vm0, %v525_v7  ;;  %422 = vmatprep.mubr.msk.f32.mxu1 %vm524_vm0, %v525_v7  ;;  %v449_v25 = vpack.c.bf16 %v283_v22, %v282_v21  ;;  %s530_s25 = smov 96   ;;  %s531_s26 = smov [#allocation5]   ;;  %vm373_vm8 = vcmask 785408  }
  0x18   :  { %441 = vmatpush3.bf16.msra.mxu0 %v440_v6  ;;  %444 = vmatpush3.bf16.msra.mxu1 %v443_v10  ;;  %s382_s27 = sshll.u32 %s531_s26, 4  ;;  %s383_s27 = int_to_ptr.vmem [resolvable:$true] %s382_s27 }
  0x19   :  { %445 = vmatprep.subr.bf16.mxu0 %v523_v2  ;;  %448 = vmatprep.subr.bf16.mxu1 %v523_v2  ;;  %s492_s28 = scalar_lea.vmem %s383_s27, 128  ;;  %p497_p9 = scmp.lt.s32.totalorder %s383_s27, %s383_s27 }
  0x1a   :  { %466 = vset.pattern.permute.xlu0 %v526_v11  ;;  %468 = vset.pattern.permute.xlu1 %v527_v12  ;;  %p493_p8 = scmp.ne.s32.totalorder %s383_s27, %s492_s28  ;;  %p498_p10 = scmp.lt.s32.totalorder %s492_s28, %s492_s28 }
  0x1b   :  { %112 = vperm.xlu0 %466, %v26_v3   ;;  %276 = vperm.xlu1 %468, %v26_v3  }
  0x1c   :  { %p499_p11 = por %p498_p10, %p497_p9 }
  0x1e   :  { %p500_p12 = pnand %p499_p11, %p493_p8 }
  0x1f   :  { %469 = vset.pattern.permute.xlu0 %v527_v12 }
  0x95   :  { %v31_v17 = vpop.permute.xlu0 %30  ;;  %v195_v18 = vpop.permute.xlu1 %194 }
  0x96   :  { %vm32_vm2 = vcmp.eq.s32.totalorder %v28_v14, %v31_v17  ;;  %vm196_vm3 = vcmp.eq.s32.totalorder %v28_v14, %v195_v18 }
  0x97   :  { %v391_v20 = vsel %vm32_vm2, 1.0, %v525_v7  ;;  %v395_v23 = vsel %vm196_vm3, 1.0, %v525_v7 }
  0x98   :  { %416 = vmatmul.mubr.msk.f32.vlgmr.msra.gmra.mrb[0].mxu0 %vm37_vm1, %v391_v20 }
  0x99   :  { %447 = vmatpush3.bf16.msra.mxu0 %v446_v19  ;;  %429 = vmatprep.mubr.msk.f32.mxu0 %vm524_vm0, %v525_v7 }
  0x9a   :  { %v113_v24 = vpop.permute.xlu0 %112  ;;  %v277_v26 = vpop.permute.xlu1 %276 }
  0x9b   :  { %vm114_vm4 = vcmp.eq.s32.totalorder %v28_v14, %v113_v24  ;;  %vm278_vm5 = vcmp.eq.s32.totalorder %v28_v14, %v277_v26 }
  0x9c   :  { %v393_v27 = vsel %vm114_vm4, 1.0, %v525_v7  ;;  %430 = vmatmul.mubr.msk.f32.vlgmr.msra.gmra.mrb[2].mxu0 %vm37_vm1, %v395_v23  ;;  %v397_v28 = vsel %vm278_vm5, 1.0, %v525_v7 }
  0x9d   :  { %423 = vmatmul.mubr.msk.f32.vlgmr.msra.gmra.mrb[0].mxu1 %vm37_vm1, %v393_v27 }
  0x9e   :  { %450 = vmatpush3.bf16.msra.mxu1 %v449_v25  ;;  %436 = vmatprep.mubr.msk.f32.mxu1 %vm524_vm0, %v525_v7 }
  0xa1   :  { %437 = vmatmul.mubr.msk.f32.vlgmr.msra.gmra.mrb[2].mxu1 %vm37_vm1, %v397_v28 }
 0x16b   :  { %v107_v29 = vpop.f32.mrb[0].mxu0 }
 0x16c   :  { %v417_v30 = vpop.f32.mrb[1].mxu0 }
 0x16f   :  { %v271_v31 = vpop.f32.mrb[2].mxu0 }
 0x170   :  { %362 = vrot.lane.b32.xlu0 %v271_v31, %s528_s0  ;;  %v189_v32 = vpop.f32.mrb[0].mxu1  ;;  %v431_v33 = vpop.f32.mrb[3].mxu0 }
 0x171   :  { %358 = vrot.lane.b32.xlu1 %v189_v32, %s529_s1  ;;  %v424_v34 = vpop.f32.mrb[1].mxu1 }
 0x174   :  { %v353_v35 = vpop.f32.mrb[2].mxu1 }
 0x175   :  { %366 = vrot.lane.b32.xlu1 %v353_v35, %s530_s25  ;;  %v438_v36 = vpop.f32.mrb[3].mxu1 }
 0x1e2   :  { %v363_v39 = vpop.permute.xlu0 %362 }
 0x1e3   :  { %v359_v37 = vpop.permute.xlu1 %358 }
 0x1e4   :  { %v370_v38 = vsel %vm369_vm6, %v107_v29, %v359_v37 }
 0x1e5   :  { %v372_v41 = vsel %vm371_vm7, %v370_v38, %v363_v39 }
 0x1e7   :  { %v367_v40 = vpop.permute.xlu1 %366 }
 0x1e8   :  { %v374_v42 = vsel %vm373_vm8, %v372_v41, %v367_v40 }
 0x1e9   :  { %375 = vst [vmem:[#allocation5] sm:$0xff] %v374_v42 }
 0x1ea   :  { %503 = shalt.err (!%p500_p12)
}
 0x1eb   :  { %s504_s3 = scalar_lea.hbm %s584_s2, 128 }
 0x1ec   :  { %p505_p13 = scmp.ne.s32.totalorder %s584_s2, %s504_s3  ;;  %p508_p0 = scmp.lt.u32.totalorder %s504_s3, %s584_s2 }
 0x1ee   :  { %p510_p1 = pnand %p508_p0, %p505_p13 }
 0x1f0   :  { %513 = shalt.err (!%p510_p1)
}
 0x1f1   :  { %385 = dma.vmem_to_hbm [thread:$0]  %s383_s27, 128, %s584_s2, [#allocation4]  }
 0x1f2   :  { %516 = dma.done.wait [#allocation4], 128  }
 0x1f3   :  { %517 = vsyncadd [#allocation4], 4294967168 }
 0x1f4   :  { %389 = vsyncpa [#allocation3], 1 }
 0x1f5   :  { %390 = vsyncpa [#allocation4], 1 }

</bundles_post_ra>
